<compile_context>
chip_gen: v7x
topology: tpu7x:2x2x1
jax: 0.10.0
libtpu: 0.0.40
codegen_flags: <defaults>
</compile_context>

<pallas_src>
import functools

import jax
import jax.numpy as jnp
from jax.experimental import pallas as pl
from jax.experimental.pallas import tpu as pltpu


def _round_up(a: int, b: int) -> int:
    return ((a + b - 1) // b) * b


def _so3_gated_kernel(x_ref, wexp_ref, bexp_ref, y_ref, *, F: int):
    x = x_ref[...]                                    # (tn, S*F), lane-dense slab
    s0 = x[:, :F].astype(jnp.float32)                 # (tn, F) — the l=0, m=0 channel

    # h = s0 @ W_exp + b_exp, with the per-(l,m) replication already baked into
    # W_exp / b_exp, so the (otherwise idle) MXU does the expansion for free.
    h = jnp.dot(s0, wexp_ref[...], preferred_element_type=jnp.float32)
    h = h + bexp_ref[0, :]                            # (tn, S*F)

    g = jax.nn.sigmoid(h).astype(x.dtype)             # gate in f32, applied in x.dtype
    y_ref[...] = x * g


def _pick_tile(N: int, tile_n: int) -> int:
    # Big enough to amortize per-step overhead, small enough that
    #  (a) double-buffered blocks + temps fit v5e's 16 MiB scoped VMEM,
    #  (b) the parallel row axis keeps >= ~8 steps for v7x's two TCs.
    target = max(512, _round_up(pl.cdiv(N, 8), 8))    # aim for >= ~8 grid steps
    tn = min(tile_n, target)
    tn = min(tn, _round_up(N, 8))                     # never larger than the problem
    return max(8, _round_up(tn, 8))


def so3_parametric_gated_nonlinearity(x, weight, bias, *, lmax: int,
                                      tile_n: int = 1024):
    """x: (N, S, F); weight: ((lmax+1)*F, F) (PyTorch Linear layout);
    bias: ((lmax+1)*F,). Returns y: (N, S, F)."""
    N, S, F = x.shape
    assert S == (lmax + 1) ** 2, "S must equal (lmax+1)^2"
    SF = S * F

    # Lane-dense 2D layout; NO padding / slicing (Pallas masks the ragged tail).
    x2d = x.reshape(N, SF)

    # Fold the per-l -> per-(l,m) replication into the weights (one-time, tiny).
    wt = weight.T.astype(jnp.float32)                 # (F, (lmax+1)*F)
    b32 = bias.astype(jnp.float32)
    w_parts, b_parts = [], []
    for l in range(lmax + 1):
        w_parts.append(jnp.tile(wt[:, l * F:(l + 1) * F], (1, 2 * l + 1)))
        b_parts.append(jnp.tile(b32[l * F:(l + 1) * F], (2 * l + 1,)))
    w_exp = jnp.concatenate(w_parts, axis=1)          # (F, S*F)
    b_exp = jnp.concatenate(b_parts).reshape(1, SF)   # (1, S*F)

    tn = _pick_tile(N, tile_n)
    grid = (pl.cdiv(N, tn),)

    itemsize = jnp.dtype(x.dtype).itemsize
    cost = pl.CostEstimate(
        flops=2 * N * F * SF + N * SF,                # tiny matmul + gating multiply
        transcendentals=N * SF,                       # sigmoid
        bytes_accessed=2 * N * SF * itemsize + w_exp.size * 4,
    )

    kernel = functools.partial(_so3_gated_kernel, F=F)

    y2d = pl.pallas_call(
        kernel,
        out_shape=jax.ShapeDtypeStruct((N, SF), x.dtype),
        grid_spec=pltpu.PrefetchScalarGridSpec(
            num_scalar_prefetch=0,
            grid=grid,
            in_specs=[
                pl.BlockSpec((tn, SF), lambda i: (i, 0)),   # x tile over atoms
                pl.BlockSpec((F, SF), lambda i: (0, 0)),    # expanded W^T resident
                pl.BlockSpec((1, SF), lambda i: (0, 0)),    # expanded bias resident
            ],
            out_specs=pl.BlockSpec((tn, SF), lambda i: (i, 0)),
        ),
        compiler_params=pltpu.CompilerParams(
            dimension_semantics=("parallel",),              # megacore shards rows
        ),
        cost_estimate=cost,
    )(x2d, w_exp, b_exp)

    return y2d.reshape(N, S, F)


def _reference(x, weight, bias, lmax):
    # Pure-JAX reference mirroring the PyTorch forward.
    N, S, F = x.shape
    s0 = x[:, 0, :]
    h = s0 @ weight.T + bias                          # (N, (lmax+1)*F)
    h = h.reshape(N, lmax + 1, F)
    lidx = jnp.concatenate(
        [jnp.full((2 * l + 1,), l, dtype=jnp.int32) for l in range(lmax + 1)]
    )
    h = h[:, lidx]                                    # (N, S, F)
    return x * jax.nn.sigmoid(h)


if __name__ == "__main__":
    lmax = 2
    n_in = 32                                         # F
    S = (lmax + 1) ** 2                               # 9
    N = 100                                           # ragged (not a multiple of 8)

    key = jax.random.PRNGKey(0)
    kx, kw, kb = jax.random.split(key, 3)

    x = jax.random.normal(kx, (N, S, n_in), dtype=jnp.float32)
    # Deterministic "Linear(n_in, n_in*(lmax+1))" params (PyTorch layout).
    weight = jax.random.normal(kw, ((lmax + 1) * n_in, n_in), dtype=jnp.float32) * 0.1
    bias = jax.random.normal(kb, ((lmax + 1) * n_in,), dtype=jnp.float32) * 0.1

    y_ref = _reference(x, weight, bias, lmax)

    # 1) Default config (single tile covering all rows, ragged tail masked).
    y = so3_parametric_gated_nonlinearity(x, weight, bias, lmax=lmax)
    y = jax.block_until_ready(y)
    assert y.shape == (N, S, n_in)
    assert jnp.allclose(y, y_ref, atol=1e-5, rtol=1e-5), "mismatch vs reference"

    # 2) Small tile to exercise the multi-step grid + ragged last-block path.
    y2 = so3_parametric_gated_nonlinearity(x, weight, bias, lmax=lmax, tile_n=32)
    y2 = jax.block_until_ready(y2)
    assert jnp.allclose(y2, y_ref, atol=1e-5, rtol=1e-5), "mismatch vs reference (tiled)"

    print("KERNEL_OK")
</pallas_src>

<mosaic_0001>
module attributes {stable_mosaic.version = 11 : i64} {
  func.func @_so3_gated_kernel(%arg0: i32, %arg1: memref<104x288xf32, #tpu.memory_space<vmem>>, %arg2: memref<32x288xf32, #tpu.memory_space<vmem>>, %arg3: memref<1x288xf32, #tpu.memory_space<vmem>>, %arg4: memref<104x288xf32, #tpu.memory_space<vmem>>) attributes {dimension_semantics = [#tpu.dimension_semantics<parallel>], iteration_bounds = array<i64: 1>, scalar_prefetch = 0 : i64, scratch_operands = 0 : i64, tpu.core_type = #tpu.core_type<tc>, window_params = [{transform_indices = @transform_0, window_bounds = array<i64: 104, 288>}, {pipeline_mode = #tpu.pipeline_mode<synchronous>, transform_indices = @transform_1, window_bounds = array<i64: 32, 288>}, {pipeline_mode = #tpu.pipeline_mode<synchronous>, transform_indices = @transform_2, window_bounds = array<i64: 1, 288>}, {transform_indices = @transform_3, window_bounds = array<i64: 104, 288>}]} {
    %c0 = arith.constant 0 : index
    %c0_0 = arith.constant 0 : index
    %0 = vector.load %arg1[%c0, %c0_0] : memref<104x288xf32, #tpu.memory_space<vmem>>, vector<104x288xf32>
    %1 = vector.extract_strided_slice %0 {offsets = [0, 0], sizes = [104, 32], strides = [1, 1]} : vector<104x288xf32> to vector<104x32xf32>
    %c0_1 = arith.constant 0 : index
    %c0_2 = arith.constant 0 : index
    %2 = vector.load %arg2[%c0_1, %c0_2] : memref<32x288xf32, #tpu.memory_space<vmem>>, vector<32x288xf32>
    %cst = arith.constant dense<0.000000e+00> : vector<104x288xf32>
    %3 = tpu.matmul %1, %2, %cst {dimension_numbers = #tpu.dot_dimension_numbers<[1], [0], [0], [1], [0, 0, 1, 1], [], []>} : vector<104x32xf32>, vector<32x288xf32>, vector<104x288xf32> -> vector<104x288xf32>
    %c0_3 = arith.constant 0 : index
    %c0_4 = arith.constant 0 : index
    %4 = vector.load %arg3[%c0_3, %c0_4] : memref<1x288xf32, #tpu.memory_space<vmem>>, vector<1x288xf32>
    %5 = vector.shape_cast %4 : vector<1x288xf32> to vector<288xf32>
    %6 = vector.shape_cast %5 : vector<288xf32> to vector<1x288xf32>
    %7 = vector.broadcast %6 : vector<1x288xf32> to vector<104x288xf32>
    %8 = arith.addf %3, %7 : vector<104x288xf32>
    %9 = arith.negf %8 : vector<104x288xf32>
    %10 = math.exp %9 : vector<104x288xf32>
    %cst_5 = arith.constant 1.000000e+00 : f32
    %11 = vector.broadcast %cst_5 : f32 to vector<104x288xf32>
    %12 = arith.addf %11, %10 : vector<104x288xf32>
    %13 = arith.divf %11, %12 : vector<104x288xf32>
    %14 = arith.mulf %0, %13 : vector<104x288xf32>
    %c0_6 = arith.constant 0 : index
    %c0_7 = arith.constant 0 : index
    %15 = vector.load %arg4[%c0_6, %c0_7] : memref<104x288xf32, #tpu.memory_space<vmem>>, vector<104x288xf32>
    tpu.vector_store %arg4[%c0_6, %c0_7], %14 {strides = array<i32>} : memref<104x288xf32, #tpu.memory_space<vmem>>, vector<104x288xf32>,
    return
  }
  func.func @transform_0(%arg0: i32) -> (i32, i32) {
    %c0_i32 = arith.constant 0 : i32
    %c0_i32_0 = arith.constant 0 : i32
    return %arg0, %c0_i32 : i32, i32
  }
  func.func @transform_1(%arg0: i32) -> (i32, i32) {
    %c0_i32 = arith.constant 0 : i32
    %c0_i32_0 = arith.constant 0 : i32
    %c0_i32_1 = arith.constant 0 : i32
    return %c0_i32, %c0_i32_0 : i32, i32
  }
  func.func @transform_2(%arg0: i32) -> (i32, i32) {
    %c0_i32 = arith.constant 0 : i32
    %c0_i32_0 = arith.constant 0 : i32
    %c0_i32_1 = arith.constant 0 : i32
    return %c0_i32, %c0_i32_0 : i32, i32
  }
  func.func @transform_3(%arg0: i32) -> (i32, i32) {
    %c0_i32 = arith.constant 0 : i32
    %c0_i32_0 = arith.constant 0 : i32
    return %arg0, %c0_i32 : i32, i32
  }
}

</mosaic_0001>

<bundles_post_ra>
// kernel: tpu_custom_call.1
= control target key start
LH: loop header
LB: loop body
LE: loop exit
PB: predicated region body
PF: predicated region fallthrough
CT: control target
= control target key end

     0   :  { %v1013_v2 = vmov 0.0|0.0   ;;  %v1014_v4 = vmov 0.0   ;;  %vm1015_vm0 = vmmov 0   ;;  %vm82_vm1 = vcmask 261120   ;;  %s1542_s1 = inlined_call_operand.vmem [shape: f32[32,288], index: 1, kind: input, shape index: {}]   ;;  %s1543_s0 = inlined_call_operand.vmem [shape: f32[100,288], index: 0, kind: input, shape index: {}]   ;;  %s1544_s2 = inlined_call_operand.vmem [shape: f32[1,288], index: 2, kind: input, shape index: {}]   ;;  %s1545_s3 = inlined_call_operand.vmem [shape: f32[100,288], index: 3, kind: output, shape index: {}]  }
   0x1   :  { %v54_v0 = vld [vmem:[%s1542_s1 + $0x8] sm:$0xff]  ;;  %v57_v1 = vld [vmem:[%s1542_s1 + $0x20] sm:$0xff]  ;;  %848 = vmatprep.subr.bf16.mxu1 %v1013_v2  ;;  %186 = vmatprep.mubr.f32.mxu0 %v1014_v4  ;;  %v56_v6 = vld [vmem:[%s1542_s1 + $0x18] sm:$0xff]  ;;  %v67_v33 = vlaneseq }
   0x2   :  { %v53_v3 = vld [vmem:[%s1542_s1] sm:$0xff]  ;;  %v840_v5 = vpack.c.bf16 %v57_v1, %v54_v0  ;;  %v55_v7 = vld [vmem:[%s1542_s1 + $0x10] sm:$0xff]  ;;  %v58_v8 = vld [vmem:[%s1542_s1 + $0x28] sm:$0xff]  ;;  %801 = vmatprep.mubr.msk.f32.mxu1 %vm1015_vm0, %v1014_v4 }
   0x3   :  { %v842_v9 = vpack.c.bf16 %v56_v6, %v53_v3  ;;  %v849_v10 = vpack.c.bf16 %v58_v8, %v55_v7  ;;  %v60_v11 = vld [vmem:[%s1542_s1 + $0x38] sm:$0xff]  ;;  %v63_v12 = vld [vmem:[%s1542_s1 + $0x50] sm:$0xff]  ;;  %v62_v15 = vld [vmem:[%s1542_s1 + $0x48] sm:$0xff]  ;;  %v68_v34 = vshrl.u32 %v67_v33, 7 }
   0x4   :  { %v59_v13 = vld [vmem:[%s1542_s1 + $0x30] sm:$0xff]  ;;  %841 = vmatprep.subr.bf16.mxu0 %v840_v5  ;;  %v844_v14 = vpack.c.bf16 %v63_v12, %v60_v11  ;;  %v61_v16 = vld [vmem:[%s1542_s1 + $0x40] sm:$0xff]  ;;  %v64_v17 = vld [vmem:[%s1542_s1 + $0x58] sm:$0xff] }
   0x5   :  { %843 = vmatpush1.bf16.msra.mxu0 %v842_v9  ;;  %850 = vmatpush3.bf16.msra.mxu1 %v849_v10  ;;  %v846_v18 = vpack.c.bf16 %v62_v15, %v59_v13  ;;  %v852_v19 = vpack.c.bf16 %v64_v17, %v61_v16  ;;  %v1078_v20 = vld [vmem:[%s1543_s0] sm:$0xff]  ;;  %v1090_v21 = vld [vmem:[%s1543_s0 + $0x18] sm:$0xff]  ;;  %v1102_v22 = vld [vmem:[%s1543_s0 + $0x30] sm:$0xff]  ;;  %v69_v35 = vsub.s32 0, %v68_v34  ;;  %v77_v36 = vsub.s32 2, %v68_v34 }
   0x6   :  { %845 = vmatprep.subr.bf16.mxu0 %v844_v14  ;;  %851 = vmatprep.subr.bf16.mxu1 %v1013_v2  ;;  %v1114_v23 = vld [vmem:[%s1543_s0 + $0x48] sm:$0xff]  ;;  %v1126_v24 = vld [vmem:[%s1543_s0 + $0x60] sm:$0xff]  ;;  %v1138_v25 = vld [vmem:[%s1543_s0 + $0x78] sm:$0xff]  ;;  %v73_v38 = vsub.s32 1, %v68_v34 }
   0x7   :  { %v1150_v26 = vld [vmem:[%s1543_s0 + $0x90] sm:$0xff]  ;;  %v1162_v27 = vld [vmem:[%s1543_s0 + $0xa8] sm:$0xff]  ;;  %v1174_v28 = vld [vmem:[%s1543_s0 + $0xc0] sm:$0xff] }
   0x8   :  { %v1186_v29 = vld [vmem:[%s1543_s0 + $0xd8] sm:$0xff]  ;;  %v1198_v30 = vld [vmem:[%s1543_s0 + $0xf0] sm:$0xff]  ;;  %v1210_v31 = vld [vmem:[%s1543_s0 + $0x108] sm:$0xff] }
   0x9   :  { %847 = vmatpush1.bf16.msra.mxu0 %v846_v18  ;;  %853 = vmatpush3.bf16.msra.mxu1 %v852_v19  ;;  %v1222_v32 = vld [vmem:[%s1543_s0 + $0x120] sm:$0xff] }
   0xa   :  { %v65_v37 = vld [vmem:[%s1544_s2] sm:$0x7] }
   0xb   :  { %v1231_v39 = vrot.slane %v65_v37, %v69_v35  ;;  %v1233_v40 = vrot.slane %v65_v37, %v77_v36  ;;  %v1235_v41 = vrot.slane %v65_v37, %v73_v38 }
   0xc   :  { %711 = vmatmul.mubr.msk.f32.vlgmr.msra.gmra.mrb[0].mxu0 %vm82_vm1, %v1078_v20  ;;  %802 = vmatmul.mubr.msk.f32.vlgmr.msra.gmra.mrb[0].mxu1 %vm82_vm1, %v1078_v20 }
   0xd   :  { %192 = vmatprep.mubr.f32.mxu0 %v1014_v4  ;;  %804 = vmatprep.mubr.msk.f32.mxu1 %vm1015_vm0, %v1014_v4 }
  0x10   :  { %712 = vmatmul.mubr.msk.f32.gmra.mrb[2].mxu0 %vm82_vm1, %v1090_v21  ;;  %805 = vmatmul.mubr.msk.f32.gmra.mrb[2].mxu1 %vm82_vm1, %v1090_v21 }
  0x11   :  { %198 = vmatprep.mubr.f32.mxu0 %v1014_v4  ;;  %807 = vmatprep.mubr.msk.f32.mxu1 %vm1015_vm0, %v1014_v4 }
  0x14   :  { %713 = vmatmul.mubr.msk.f32.gmra.mrb[4].mxu0 %vm82_vm1, %v1102_v22  ;;  %808 = vmatmul.mubr.msk.f32.gmra.mrb[4].mxu1 %vm82_vm1, %v1102_v22 }
  0x15   :  { %204 = vmatprep.mubr.f32.mxu0 %v1014_v4  ;;  %810 = vmatprep.mubr.msk.f32.mxu1 %vm1015_vm0, %v1014_v4 }
  0x18   :  { %714 = vmatmul.mubr.msk.f32.gmra.mrb[6].mxu0 %vm82_vm1, %v1114_v23  ;;  %811 = vmatmul.mubr.msk.f32.gmra.mrb[6].mxu1 %vm82_vm1, %v1114_v23 }
  0x19   :  { %210 = vmatprep.mubr.f32.mxu0 %v1014_v4  ;;  %813 = vmatprep.mubr.msk.f32.mxu1 %vm1015_vm0, %v1014_v4 }
  0x1c   :  { %715 = vmatmul.mubr.msk.f32.gmra.mrb[8].mxu0 %vm82_vm1, %v1126_v24  ;;  %814 = vmatmul.mubr.msk.f32.gmra.mrb[8].mxu1 %vm82_vm1, %v1126_v24 }
  0x1d   :  { %216 = vmatprep.mubr.f32.mxu0 %v1014_v4  ;;  %816 = vmatprep.mubr.msk.f32.mxu1 %vm1015_vm0, %v1014_v4 }
  0x20   :  { %716 = vmatmul.mubr.msk.f32.gmra.mrb[10].mxu0 %vm82_vm1, %v1138_v25  ;;  %817 = vmatmul.mubr.msk.f32.gmra.mrb[10].mxu1 %vm82_vm1, %v1138_v25 }
  0x21   :  { %222 = vmatprep.mubr.f32.mxu0 %v1014_v4  ;;  %819 = vmatprep.mubr.msk.f32.mxu1 %vm1015_vm0, %v1014_v4 }
  0x24   :  { %717 = vmatmul.mubr.msk.f32.gmra.mrb[12].mxu0 %vm82_vm1, %v1150_v26  ;;  %820 = vmatmul.mubr.msk.f32.gmra.mrb[12].mxu1 %vm82_vm1, %v1150_v26 }
  0x25   :  { %228 = vmatprep.mubr.f32.mxu0 %v1014_v4  ;;  %822 = vmatprep.mubr.msk.f32.mxu1 %vm1015_vm0, %v1014_v4 }
  0x28   :  { %718 = vmatmul.mubr.msk.f32.gmra.mrb[14].mxu0 %vm82_vm1, %v1162_v27  ;;  %823 = vmatmul.mubr.msk.f32.gmra.mrb[14].mxu1 %vm82_vm1, %v1162_v27 }
  0x29   :  { %234 = vmatprep.mubr.f32.mxu0 %v1014_v4  ;;  %825 = vmatprep.mubr.msk.f32.mxu1 %vm1015_vm0, %v1014_v4 }
  0x2c   :  { %719 = vmatmul.mubr.msk.f32.gmra.mrb[16].mxu0 %vm82_vm1, %v1174_v28  ;;  %826 = vmatmul.mubr.msk.f32.gmra.mrb[16].mxu1 %vm82_vm1, %v1174_v28 }
  0x2d   :  { %240 = vmatprep.mubr.f32.mxu0 %v1014_v4  ;;  %828 = vmatprep.mubr.msk.f32.mxu1 %vm1015_vm0, %v1014_v4 }
  0x30   :  { %720 = vmatmul.mubr.msk.f32.gmra.mrb[18].mxu0 %vm82_vm1, %v1186_v29  ;;  %829 = vmatmul.mubr.msk.f32.gmra.mrb[18].mxu1 %vm82_vm1, %v1186_v29 }
  0x31   :  { %246 = vmatprep.mubr.f32.mxu0 %v1014_v4  ;;  %831 = vmatprep.mubr.msk.f32.mxu1 %vm1015_vm0, %v1014_v4 }
  0x34   :  { %721 = vmatmul.mubr.msk.f32.gmra.mrb[20].mxu0 %vm82_vm1, %v1198_v30  ;;  %832 = vmatmul.mubr.msk.f32.gmra.mrb[20].mxu1 %vm82_vm1, %v1198_v30 }
  0x35   :  { %252 = vmatprep.mubr.f32.mxu0 %v1014_v4  ;;  %834 = vmatprep.mubr.msk.f32.mxu1 %vm1015_vm0, %v1014_v4 }
  0x38   :  { %722 = vmatmul.mubr.msk.f32.gmra.mrb[22].mxu0 %vm82_vm1, %v1210_v31  ;;  %835 = vmatmul.mubr.msk.f32.gmra.mrb[22].mxu1 %vm82_vm1, %v1210_v31 }
  0x39   :  { %258 = vmatprep.mubr.f32.mxu0 %v1014_v4  ;;  %837 = vmatprep.mubr.msk.f32.mxu1 %vm1015_vm0, %v1014_v4 }
  0x3c   :  { %723 = vmatmul.mubr.msk.f32.gmra.mrb[24].mxu0 %vm82_vm1, %v1222_v32  ;;  %838 = vmatmul.mubr.msk.f32.gmra.mrb[24].mxu1 %vm82_vm1, %v1222_v32 }
  0xdf   :  { %v188_v42 = vpop.f32.mrb[0].mxu0  ;;  %v331_v43 = vpop.f32.mrb[0].mxu1 }
  0xe0   :  { %v189_v44 = vadd.f32 %v188_v42, %v1231_v39  ;;  %v332_v45 = vadd.f32 %v331_v43, %v1233_v40  ;;  %v190_v46 = vpop.f32.mrb[1].mxu0  ;;  %v803_v47 = vpop.f32.mrb[1].mxu1 }
  0xe1   :  { %v191_v48 = vadd.f32 %v190_v46, %v1235_v41 }
  0xe2   :  { %v737_v49 = vmul.f32 -1.442695, %v189_v44  ;;  %v739_v50 = vmul.f32 -1.442695, %v332_v45 }
  0xe3   :  { %v738_v51 = vmul.f32 -1.442695, %v191_v48  ;;  %v194_v52 = vpop.f32.mrb[2].mxu0  ;;  %v336_v53 = vpop.f32.mrb[2].mxu1 }
  0xe4   :  { %857 = vpow2.f32 %v737_v49  ;;  %v195_v54 = vadd.f32 %v194_v52, %v1231_v39  ;;  %v337_v55 = vadd.f32 %v336_v53, %v1233_v40  ;;  %v196_v56 = vpop.f32.mrb[3].mxu0  ;;  %v806_v57 = vpop.f32.mrb[3].mxu1 }
  0xe5   :  { %859 = vpow2.f32 %v739_v50  ;;  %v197_v58 = vadd.f32 %v196_v56, %v1235_v41 }
  0xe6   :  { %861 = vpow2.f32 %v738_v51  ;;  %v740_v59 = vmul.f32 -1.442695, %v195_v54  ;;  %v742_v60 = vmul.f32 -1.442695, %v337_v55 }
  0xe7   :  { %v741_v61 = vmul.f32 -1.442695, %v197_v58  ;;  %v200_v62 = vpop.f32.mrb[4].mxu0  ;;  %v341_v63 = vpop.f32.mrb[4].mxu1 }
  0xe8   :  { %863 = vpow2.f32 %v740_v59  ;;  %v201_v0 = vadd.f32 %v200_v62, %v1231_v39  ;;  %v342_v1 = vadd.f32 %v341_v63, %v1233_v40  ;;  %v202_v2 = vpop.f32.mrb[5].mxu0  ;;  %v809_v3 = vpop.f32.mrb[5].mxu1 }
  0xe9   :  { %865 = vpow2.f32 %v742_v60  ;;  %v203_v4 = vadd.f32 %v202_v2, %v1235_v41 }
  0xea   :  { %867 = vpow2.f32 %v741_v61  ;;  %v743_v5 = vmul.f32 -1.442695, %v201_v0  ;;  %v745_v6 = vmul.f32 -1.442695, %v342_v1 }
  0xeb   :  { %v744_v7 = vmul.f32 -1.442695, %v203_v4  ;;  %v206_v8 = vpop.f32.mrb[6].mxu0  ;;  %v346_v9 = vpop.f32.mrb[6].mxu1 }
  0xec   :  { %869 = vpow2.f32 %v743_v5  ;;  %v207_v10 = vadd.f32 %v206_v8, %v1231_v39  ;;  %v347_v11 = vadd.f32 %v346_v9, %v1233_v40  ;;  %v208_v12 = vpop.f32.mrb[7].mxu0  ;;  %v812_v13 = vpop.f32.mrb[7].mxu1 }
  0xed   :  { %871 = vpow2.f32 %v745_v6  ;;  %v209_v36 = vadd.f32 %v208_v12, %v1235_v41  ;;  %v16_v6 = vld [vmem:[%s1543_s0 + $0x10] sm:$0xff] }
  0xee   :  { %v858_v14 = vpop.eup %857  ;;  %873 = vpow2.f32 %v744_v7  ;;  %v746_v15 = vmul.f32 -1.442695, %v207_v10  ;;  %v748_v35 = vmul.f32 -1.442695, %v347_v11  ;;  %v15_v10 = vld [vmem:[%s1543_s0 + $0x8] sm:$0xff] }
  0xef   :  { %v860_v16 = vpop.eup %859  ;;  %v512_v17 = vadd.f32 1.0, %v858_v14  ;;  %v212_v18 = vpop.f32.mrb[8].mxu0  ;;  %v747_v50 = vmul.f32 -1.442695, %v209_v36 }
  0xf0   :  { %v351_v19 = vpop.f32.mrb[8].mxu1  ;;  %v862_v33 = vpop.eup %861  ;;  %v514_v34 = vadd.f32 1.0, %v860_v16  ;;  %875 = vpow2.f32 %v746_v15  ;;  %v213_v51 = vadd.f32 %v212_v18, %v1231_v39 }
  0xf1   :  { %v214_v37 = vpop.f32.mrb[9].mxu0  ;;  %v815_v38 = vpop.f32.mrb[9].mxu1  ;;  %877 = vrcp.f32 %v512_v17  ;;  %v513_v42 = vadd.f32 1.0, %v862_v33  ;;  %v352_v56 = vadd.f32 %v351_v19, %v1233_v40 }
  0xf2   :  { %v864_v43 = vpop.eup %863  ;;  %879 = vrcp.f32 %v514_v34  ;;  %v215_v59 = vadd.f32 %v214_v37, %v1235_v41  ;;  %v749_v0 = vmul.f32 -1.442695, %v213_v51 }
  0xf3   :  { %v866_v44 = vpop.eup %865  ;;  %881 = vrcp.f32 %v513_v42  ;;  %v515_v45 = vadd.f32 1.0, %v864_v43  ;;  %v218_v46 = vpop.f32.mrb[10].mxu0  ;;  %v751_v7 = vmul.f32 -1.442695, %v352_v56  ;;  %v19_v42 = vld [vmem:[%s1543_s0 + $0x28] sm:$0xff] }
  0xf4   :  { %v356_v47 = vpop.f32.mrb[10].mxu1  ;;  %v868_v48 = vpop.eup %867  ;;  %v517_v49 = vadd.f32 1.0, %v866_v44  ;;  %883 = vpow2.f32 %v748_v35  ;;  %v219_v1 = vadd.f32 %v218_v46, %v1231_v39  ;;  %v750_v12 = vmul.f32 -1.442695, %v215_v59 }
  0xf5   :  { %v220_v52 = vpop.f32.mrb[11].mxu0  ;;  %v818_v53 = vpop.f32.mrb[11].mxu1  ;;  %885 = vrcp.f32 %v515_v45  ;;  %v516_v54 = vadd.f32 1.0, %v868_v48  ;;  %v357_v8 = vadd.f32 %v356_v47, %v1233_v40  ;;  %v18_v45 = vld [vmem:[%s1543_s0 + $0x20] sm:$0xff] }
  0xf6   :  { %v870_v55 = vpop.eup %869  ;;  %887 = vrcp.f32 %v517_v49  ;;  %v221_v13 = vadd.f32 %v220_v52, %v1235_v41  ;;  %v752_v18 = vmul.f32 -1.442695, %v219_v1 }
  0xf7   :  { %v872_v57 = vpop.eup %871  ;;  %889 = vrcp.f32 %v516_v54  ;;  %v518_v58 = vadd.f32 1.0, %v870_v55  ;;  %v224_v60 = vpop.f32.mrb[12].mxu0 }
  0xf8   :  { %v361_v61 = vpop.f32.mrb[12].mxu1  ;;  %v874_v62 = vpop.eup %873  ;;  %v520_v63 = vadd.f32 1.0, %v872_v57  ;;  %891 = vpow2.f32 %v747_v50  ;;  %v225_v19 = vadd.f32 %v224_v60, %v1231_v39  ;;  %v753_v47 = vmul.f32 -1.442695, %v221_v13 }
  0xf9   :  { %v226_v2 = vpop.f32.mrb[13].mxu0  ;;  %v821_v3 = vpop.f32.mrb[13].mxu1  ;;  %893 = vrcp.f32 %v518_v58  ;;  %v519_v4 = vadd.f32 1.0, %v874_v62  ;;  %v362_v43 = vadd.f32 %v361_v61, %v1233_v40 }
  0xfa   :  { %v876_v5 = vpop.eup %875  ;;  %895 = vrcp.f32 %v520_v63  ;;  %v227_v48 = vadd.f32 %v226_v2, %v1235_v41  ;;  %v755_v53 = vmul.f32 -1.442695, %v225_v19 }
  0xfb   :  { %v878_v9 = vpop.eup %877  ;;  %897 = vrcp.f32 %v519_v4  ;;  %v521_v11 = vadd.f32 1.0, %v876_v5  ;;  %v230_v14 = vpop.f32.mrb[14].mxu0  ;;  %v757_v61 = vmul.f32 -1.442695, %v362_v43 }
  0xfc   :  { %v366_v15 = vpop.f32.mrb[14].mxu1  ;;  %v880_v16 = vpop.eup %879  ;;  %v629_v17 = vmul.f32 %v878_v9, %v1078_v20  ;;  %899 = vpow2.f32 %v749_v0  ;;  %v754_v20 = vmul.f32 -1.442695, %v357_v8  ;;  %v231_v54 = vadd.f32 %v230_v14, %v1231_v39  ;;  %v21_v0 = vld [vmem:[%s1543_s0 + $0x38] sm:$0xff] }
  0xfd   :  { %v232_v33 = vpop.f32.mrb[15].mxu0  ;;  %v824_v34 = vpop.f32.mrb[15].mxu1  ;;  %v631_v36 = vmul.f32 %v880_v16, %v16_v6  ;;  %901 = vrcp.f32 %v521_v11  ;;  %v367_v62 = vadd.f32 %v366_v15, %v1233_v40  ;;  %v756_v2 = vmul.f32 -1.442695, %v227_v48 }
  0xfe   :  { %v882_v35 = vpop.eup %881  ;;  %668 = vst [vmem:[%s1545_s3] sm:$0xff] %v629_v17  ;;  %903 = vpow2.f32 %v751_v7  ;;  %v758_v7 = vmul.f32 -1.442695, %v231_v54  ;;  %v233_v15 = vadd.f32 %v232_v33, %v1235_v41 }
  0xff   :  { %v884_v37 = vpop.eup %883  ;;  %v630_v38 = vmul.f32 %v882_v35, %v15_v10  ;;  %670 = vst.msk [vmem:[%s1545_s3 + $0x10] sm:$0xff] %vm82_vm1, %v631_v36  ;;  %905 = vpow2.f32 %v750_v12  ;;  %v1278_v49 = vpop.f32.mrb[16].mxu0  ;;  %v760_v14 = vmul.f32 -1.442695, %v367_v62 }
 0x100   :  { %v886_v44 = vpop.eup %885  ;;  %v523_v46 = vadd.f32 1.0, %v884_v37  ;;  %v1280_v50 = vpop.f32.mrb[16].mxu1  ;;  %907 = vpow2.f32 %v752_v18  ;;  %v25_v37 = vld [vmem:[%s1543_s0 + $0x58] sm:$0xff]  ;;  %v759_v43 = vmul.f32 -1.442695, %v233_v15 }
 0x101   :  { %v888_v51 = vpop.eup %887  ;;  %669 = vst [vmem:[%s1545_s3 + $0x8] sm:$0xff] %v630_v38  ;;  %v632_v52 = vmul.f32 %v886_v44, %v1090_v21  ;;  %v1287_v55 = vpop.f32.mrb[17].mxu0  ;;  %v22_v21 = vld [vmem:[%s1543_s0 + $0x40] sm:$0xff] }
 0x102   :  { %v827_v56 = vpop.f32.mrb[17].mxu1  ;;  %v890_v57 = vpop.eup %889  ;;  %v634_v58 = vmul.f32 %v888_v51, %v19_v42  ;;  %909 = vrcp.f32 %v523_v46  ;;  %v239_v62 = vadd.f32 %v1287_v55, %v1235_v41 }
 0x103   :  { %v892_v59 = vpop.eup %891  ;;  %671 = vst [vmem:[%s1545_s3 + $0x18] sm:$0xff] %v632_v52  ;;  %v633_v60 = vmul.f32 %v890_v57, %v18_v45  ;;  %911 = vpow2.f32 %v754_v20  ;;  %v1303_v3 = vpop.f32.mrb[18].mxu0  ;;  %v24_v56 = vld [vmem:[%s1543_s0 + $0x50] sm:$0xff] }
 0x104   :  { %v894_v63 = vpop.eup %893  ;;  %673 = vst.msk [vmem:[%s1545_s3 + $0x28] sm:$0xff] %vm82_vm1, %v634_v58  ;;  %v522_v1 = vadd.f32 1.0, %v892_v59  ;;  %913 = vpow2.f32 %v753_v47  ;;  %v1305_v4 = vpop.f32.mrb[18].mxu1 }
 0x105   :  { %v896_v5 = vpop.eup %895  ;;  %672 = vst [vmem:[%s1545_s3 + $0x20] sm:$0xff] %v633_v60  ;;  %v635_v6 = vmul.f32 %v894_v63, %v1102_v22  ;;  %915 = vpow2.f32 %v755_v53  ;;  %v1311_v8 = vpop.f32.mrb[19].mxu0  ;;  %v372_v60 = vadd.f32 %v1280_v50, %v1233_v40  ;;  %v377_v15 = vadd.f32 %v1305_v4, %v1233_v40 }
 0x106   :  { %v830_v9 = vpop.f32.mrb[19].mxu1  ;;  %v898_v10 = vpop.eup %897  ;;  %v637_v11 = vmul.f32 %v896_v5, %v22_v21  ;;  %917 = vrcp.f32 %v522_v1 }
 0x107   :  { %v900_v12 = vpop.eup %899  ;;  %674 = vst [vmem:[%s1545_s3 + $0x30] sm:$0xff] %v635_v6  ;;  %v636_v13 = vmul.f32 %v898_v10, %v21_v0  ;;  %919 = vpow2.f32 %v757_v61  ;;  %v1321_v17 = vpop.f32.mrb[20].mxu0 }
 0x108   :  { %v902_v16 = vpop.eup %901  ;;  %676 = vst.msk [vmem:[%s1545_s3 + $0x40] sm:$0xff] %vm82_vm1, %v637_v11  ;;  %v524_v22 = vadd.f32 1.0, %v900_v12  ;;  %921 = vpow2.f32 %v756_v2  ;;  %v1323_v18 = vpop.f32.mrb[20].mxu1  ;;  %v243_v11 = vadd.f32 %v1303_v3, %v1231_v39 }
 0x109   :  { %v904_v19 = vpop.eup %903  ;;  %675 = vst [vmem:[%s1545_s3 + $0x38] sm:$0xff] %v636_v13  ;;  %v638_v34 = vmul.f32 %v902_v16, %v1114_v23  ;;  %923 = vpow2.f32 %v758_v7  ;;  %v1329_v33 = vpop.f32.mrb[21].mxu0  ;;  %v237_v23 = vadd.f32 %v1278_v49, %v1231_v39 }
 0x10a   :  { %v833_v35 = vpop.f32.mrb[21].mxu1  ;;  %v906_v36 = vpop.eup %905  ;;  %925 = vrcp.f32 %v524_v22  ;;  %v526_v38 = vadd.f32 1.0, %v904_v19  ;;  %v28_v22 = vld [vmem:[%s1543_s0 + $0x70] sm:$0xff] }
 0x10b   :  { %v908_v42 = vpop.eup %907  ;;  %677 = vst [vmem:[%s1545_s3 + $0x48] sm:$0xff] %v638_v34  ;;  %v525_v20 = vadd.f32 1.0, %v906_v36  ;;  %927 = vpow2.f32 %v760_v14  ;;  %v1339_v46 = vpop.f32.mrb[22].mxu0  ;;  %v761_v59 = vmul.f32 -1.442695, %v237_v23  ;;  %v27_v35 = vld [vmem:[%s1543_s0 + $0x68] sm:$0xff] }
 0x10c   :  { %v910_v44 = vpop.eup %909  ;;  %929 = vrcp.f32 %v526_v38  ;;  %v527_v45 = vadd.f32 1.0, %v908_v42  ;;  %v1341_v47 = vpop.f32.mrb[22].mxu1  ;;  %v763_v14 = vmul.f32 -1.442695, %v372_v60  ;;  %v762_v36 = vmul.f32 -1.442695, %v239_v62 }
 0x10d   :  { %v912_v48 = vpop.eup %911  ;;  %v640_v51 = vmul.f32 %v910_v44, %v25_v37  ;;  %931 = vrcp.f32 %v525_v20  ;;  %v1343_v52 = vpop.f32.mrb[23].mxu0  ;;  %v245_v37 = vadd.f32 %v1311_v8, %v1235_v41  ;;  %v764_v42 = vmul.f32 -1.442695, %v243_v11  ;;  %v34_v62 = vld [vmem:[%s1543_s0 + $0xa0] sm:$0xff] }
 0x10e   :  { %v836_v53 = vpop.f32.mrb[23].mxu1  ;;  %v914_v54 = vpop.eup %913  ;;  %933 = vrcp.f32 %v527_v45  ;;  %v529_v49 = vadd.f32 1.0, %v912_v48  ;;  %v249_v20 = vadd.f32 %v1321_v17, %v1231_v39  ;;  %v766_v23 = vmul.f32 -1.442695, %v377_v15  ;;  %v31_v48 = vld [vmem:[%s1543_s0 + $0x88] sm:$0xff] }
 0x10f   :  { %v916_v57 = vpop.eup %915  ;;  %679 = vst.msk [vmem:[%s1545_s3 + $0x58] sm:$0xff] %vm82_vm1, %v640_v51  ;;  %v528_v58 = vadd.f32 1.0, %v914_v54  ;;  %935 = vpow2.f32 %v759_v43  ;;  %v260_v63 = vpop.f32.mrb[24].mxu0  ;;  %v382_v44 = vadd.f32 %v1323_v18, %v1233_v40  ;;  %v30_v53 = vld [vmem:[%s1543_s0 + $0x80] sm:$0xff]  ;;  %v765_v18 = vmul.f32 -1.442695, %v245_v37 }
 0x110   :  { %v918_v21 = vpop.eup %917  ;;  %937 = vrcp.f32 %v529_v49  ;;  %v530_v61 = vadd.f32 1.0, %v916_v57  ;;  %v391_v0 = vpop.f32.mrb[24].mxu1  ;;  %v1357_v5 = vadd.f32 %v260_v63, %v1231_v39  ;;  %v251_v54 = vadd.f32 %v1329_v33, %v1235_v41 }
 0x111   :  { %v920_v1 = vpop.eup %919  ;;  %v639_v2 = vmul.f32 %v918_v21, %v24_v56  ;;  %939 = vrcp.f32 %v528_v58  ;;  %v1360_v6 = vadd.f32 %v391_v0, %v1233_v40  ;;  %v262_v7 = vpop.f32.mrb[25].mxu0  ;;  %v767_v57 = vmul.f32 -1.442695, %v249_v20 }
 0x112   :  { %v839_v9 = vpop.f32.mrb[25].mxu1  ;;  %v922_v50 = vpop.eup %921  ;;  %941 = vrcp.f32 %v530_v61  ;;  %v532_v10 = vadd.f32 1.0, %v920_v1  ;;  %v1365_v55 = vadd.f32 %v262_v7, %v1235_v41  ;;  %v769_v60 = vmul.f32 -1.442695, %v382_v44 }
 0x113   :  { %v924_v12 = vpop.eup %923  ;;  %678 = vst [vmem:[%s1545_s3 + $0x50] sm:$0xff] %v639_v2  ;;  %v531_v13 = vadd.f32 1.0, %v922_v50  ;;  %943 = vpow2.f32 %v761_v59  ;;  %v387_v33 = vadd.f32 %v1341_v47, %v1233_v40  ;;  %v768_v40 = vmul.f32 -1.442695, %v251_v54 }
 0x114   :  { %v926_v16 = vpop.eup %925  ;;  %945 = vrcp.f32 %v532_v10  ;;  %v533_v3 = vadd.f32 1.0, %v924_v12  ;;  %v257_v47 = vadd.f32 %v1343_v52, %v1235_v41  ;;  %v37_v41 = vld [vmem:[%s1543_s0 + $0xb8] sm:$0xff] }
 0x115   :  { %v928_v19 = vpop.eup %927  ;;  %v641_v34 = vmul.f32 %v926_v16, %v1126_v24  ;;  %947 = vrcp.f32 %v531_v13  ;;  %v772_v9 = vmul.f32 -1.442695, %v387_v33 }
 0x116   :  { %v930_v4 = vpop.eup %929  ;;  %949 = vrcp.f32 %v533_v3  ;;  %v535_v38 = vadd.f32 1.0, %v928_v19  ;;  %v771_v12 = vmul.f32 -1.442695, %v257_v47 }
 0x117   :  { %v932_v43 = vpop.eup %931  ;;  %680 = vst [vmem:[%s1545_s3 + $0x60] sm:$0xff] %v641_v34  ;;  %v643_v24 = vmul.f32 %v930_v4, %v28_v22  ;;  %951 = vpow2.f32 %v763_v14 }
 0x118   :  { %v934_v45 = vpop.eup %933  ;;  %v642_v8 = vmul.f32 %v932_v43, %v27_v35  ;;  %953 = vrcp.f32 %v535_v38  ;;  %v773_v35 = vmul.f32 -1.442695, %v1357_v5 }
 0x119   :  { %v936_v51 = vpop.eup %935  ;;  %682 = vst.msk [vmem:[%s1545_s3 + $0x70] sm:$0xff] %vm82_vm1, %v643_v24  ;;  %v644_v17 = vmul.f32 %v934_v45, %v1138_v25  ;;  %955 = vpow2.f32 %v762_v36  ;;  %v255_v25 = vadd.f32 %v1339_v46, %v1231_v39  ;;  %v33_v46 = vld [vmem:[%s1543_s0 + $0x98] sm:$0xff] }
 0x11a   :  { %v938_v56 = vpop.eup %937  ;;  %681 = vst [vmem:[%s1545_s3 + $0x68] sm:$0xff] %v642_v8  ;;  %v534_v49 = vadd.f32 1.0, %v936_v51  ;;  %957 = vpow2.f32 %v764_v42  ;;  %v40_v51 = vld [vmem:[%s1543_s0 + $0xd0] sm:$0xff] }
 0x11b   :  { %v940_v58 = vpop.eup %939  ;;  %683 = vst [vmem:[%s1545_s3 + $0x78] sm:$0xff] %v644_v17  ;;  %v646_v59 = vmul.f32 %v938_v56, %v31_v48  ;;  %959 = vpow2.f32 %v766_v23  ;;  %v770_v2 = vmul.f32 -1.442695, %v255_v25  ;;  %v775_v23 = vmul.f32 -1.442695, %v1360_v6 }
 0x11c   :  { %v942_v21 = vpop.eup %941  ;;  %v645_v61 = vmul.f32 %v940_v58, %v30_v53  ;;  %961 = vrcp.f32 %v534_v49  ;;  %v43_v58 = vld [vmem:[%s1543_s0 + $0xe8] sm:$0xff] }
 0x11d   :  { %v944_v63 = vpop.eup %943  ;;  %685 = vst.msk [vmem:[%s1545_s3 + $0x88] sm:$0xff] %vm82_vm1, %v646_v59  ;;  %v647_v39 = vmul.f32 %v942_v21, %v1150_v26  ;;  %963 = vpow2.f32 %v765_v18  ;;  %v774_v18 = vmul.f32 -1.442695, %v1365_v55 }
 0x11e   :  { %v946_v0 = vpop.eup %945  ;;  %684 = vst [vmem:[%s1545_s3 + $0x80] sm:$0xff] %v645_v61  ;;  %v536_v1 = vadd.f32 1.0, %v944_v63  ;;  %965 = vpow2.f32 %v767_v57  ;;  %v42_v61 = vld [vmem:[%s1543_s0 + $0xe0] sm:$0xff] }
 0x11f   :  { %v948_v7 = vpop.eup %947  ;;  %686 = vst [vmem:[%s1545_s3 + $0x90] sm:$0xff] %v647_v39  ;;  %v649_v26 = vmul.f32 %v946_v0, %v34_v62  ;;  %967 = vpow2.f32 %v769_v60 }
 0x120   :  { %v950_v50 = vpop.eup %949  ;;  %v648_v10 = vmul.f32 %v948_v7, %v33_v46  ;;  %969 = vrcp.f32 %v536_v1 }
 0x121   :  { %v952_v52 = vpop.eup %951  ;;  %688 = vst.msk [vmem:[%s1545_s3 + $0xa0] sm:$0xff] %vm82_vm1, %v649_v26  ;;  %v650_v11 = vmul.f32 %v950_v50, %v1162_v27  ;;  %971 = vpow2.f32 %v768_v40  ;;  %v36_v27 = vld [vmem:[%s1543_s0 + $0xb0] sm:$0xff] }
 0x122   :  { %v954_v13 = vpop.eup %953  ;;  %687 = vst [vmem:[%s1545_s3 + $0x98] sm:$0xff] %v648_v10  ;;  %v538_v14 = vadd.f32 1.0, %v952_v52  ;;  %973 = vpow2.f32 %v770_v2  ;;  %v45_v2 = vld [vmem:[%s1543_s0 + $0xf8] sm:$0xff] }
 0x123   :  { %v956_v15 = vpop.eup %955  ;;  %689 = vst [vmem:[%s1545_s3 + $0xa8] sm:$0xff] %v650_v11  ;;  %v652_v16 = vmul.f32 %v954_v13, %v37_v41  ;;  %975 = vpow2.f32 %v772_v9 }
 0x124   :  { %v958_v22 = vpop.eup %957  ;;  %977 = vrcp.f32 %v538_v14  ;;  %v537_v3 = vadd.f32 1.0, %v956_v15 }
 0x125   :  { %v960_v19 = vpop.eup %959  ;;  %691 = vst.msk [vmem:[%s1545_s3 + $0xb8] sm:$0xff] %vm82_vm1, %v652_v16  ;;  %v539_v34 = vadd.f32 1.0, %v958_v22  ;;  %979 = vpow2.f32 %v771_v12  ;;  %v48_v12 = vld [vmem:[%s1543_s0 + $0x110] sm:$0xff] }
 0x126   :  { %v962_v36 = vpop.eup %961  ;;  %981 = vrcp.f32 %v537_v3  ;;  %v541_v37 = vadd.f32 1.0, %v960_v19  ;;  %v52_v3 = vld [vmem:[%s1543_s0 + $0x130] sm:$0xff] }
 0x127   :  { %v964_v4 = vpop.eup %963  ;;  %v651_v38 = vmul.f32 %v962_v36, %v36_v27  ;;  %983 = vrcp.f32 %v539_v34 }
 0x128   :  { %v966_v42 = vpop.eup %965  ;;  %985 = vrcp.f32 %v541_v37  ;;  %v540_v20 = vadd.f32 1.0, %v964_v4 }
 0x129   :  { %v968_v43 = vpop.eup %967  ;;  %690 = vst [vmem:[%s1545_s3 + $0xb0] sm:$0xff] %v651_v38  ;;  %v542_v24 = vadd.f32 1.0, %v966_v42  ;;  %987 = vpow2.f32 %v773_v35  ;;  %v51_v35 = vld [vmem:[%s1543_s0 + $0x128] sm:$0xff] }
 0x12a   :  { %v970_v44 = vpop.eup %969  ;;  %989 = vrcp.f32 %v540_v20  ;;  %v544_v5 = vadd.f32 1.0, %v968_v43 }
 0x12b   :  { %v972_v45 = vpop.eup %971  ;;  %v653_v8 = vmul.f32 %v970_v44, %v1174_v28  ;;  %991 = vrcp.f32 %v542_v24  ;;  %v39_v28 = vld [vmem:[%s1543_s0 + $0xc8] sm:$0xff] }
 0x12c   :  { %v974_v48 = vpop.eup %973  ;;  %993 = vrcp.f32 %v544_v5  ;;  %v543_v17 = vadd.f32 1.0, %v972_v45 }
 0x12d   :  { %v976_v53 = vpop.eup %975  ;;  %692 = vst [vmem:[%s1545_s3 + $0xc0] sm:$0xff] %v653_v8  ;;  %v545_v6 = vadd.f32 1.0, %v974_v48  ;;  %995 = vpow2.f32 %v775_v23 }
 0x12e   :  { %v978_v54 = vpop.eup %977  ;;  %997 = vrcp.f32 %v543_v17  ;;  %v547_v56 = vadd.f32 1.0, %v976_v53 }
 0x12f   :  { %v980_v49 = vpop.eup %979  ;;  %v655_v57 = vmul.f32 %v978_v54, %v40_v51  ;;  %999 = vrcp.f32 %v545_v6 }
 0x130   :  { %v982_v25 = vpop.eup %981  ;;  %1001 = vrcp.f32 %v547_v56  ;;  %v546_v59 = vadd.f32 1.0, %v980_v49 }
 0x131   :  { %v984_v60 = vpop.eup %983  ;;  %694 = vst.msk [vmem:[%s1545_s3 + $0xd0] sm:$0xff] %vm82_vm1, %v655_v57  ;;  %v654_v55 = vmul.f32 %v982_v25, %v39_v28  ;;  %1003 = vpow2.f32 %v774_v18 }
 0x132   :  { %v986_v33 = vpop.eup %985  ;;  %v656_v21 = vmul.f32 %v984_v60, %v1186_v29  ;;  %1005 = vrcp.f32 %v546_v59  ;;  %v46_v29 = vld [vmem:[%s1543_s0 + $0x100] sm:$0xff] }
 0x133   :  { %v988_v62 = vpop.eup %987  ;;  %693 = vst [vmem:[%s1545_s3 + $0xc8] sm:$0xff] %v654_v55  ;;  %v658_v63 = vmul.f32 %v986_v33, %v43_v58 }
 0x134   :  { %v990_v39 = vpop.eup %989  ;;  %695 = vst [vmem:[%s1545_s3 + $0xd8] sm:$0xff] %v656_v21  ;;  %v548_v46 = vadd.f32 1.0, %v988_v62 }
 0x135   :  { %v992_v40 = vpop.eup %991  ;;  %697 = vst.msk [vmem:[%s1545_s3 + $0xe8] sm:$0xff] %vm82_vm1, %v658_v63  ;;  %v657_v47 = vmul.f32 %v990_v39, %v42_v61 }
 0x136   :  { %v994_v0 = vpop.eup %993  ;;  %v659_v1 = vmul.f32 %v992_v40, %v1198_v30  ;;  %1007 = vrcp.f32 %v548_v46  ;;  %v49_v30 = vld [vmem:[%s1543_s0 + $0x118] sm:$0xff] }
 0x137   :  { %v996_v7 = vpop.eup %995  ;;  %696 = vst [vmem:[%s1545_s3 + $0xe0] sm:$0xff] %v657_v47  ;;  %v661_v26 = vmul.f32 %v994_v0, %v46_v29 }
 0x138   :  { %v998_v9 = vpop.eup %997  ;;  %698 = vst [vmem:[%s1545_s3 + $0xf0] sm:$0xff] %v659_v1  ;;  %v550_v50 = vadd.f32 1.0, %v996_v7 }
 0x139   :  { %v1000_v10 = vpop.eup %999  ;;  %700 = vst.msk [vmem:[%s1545_s3 + $0x100] sm:$0xff] %vm82_vm1, %v661_v26  ;;  %v660_v41 = vmul.f32 %v998_v9, %v45_v2 }
 0x13a   :  { %v1002_v52 = vpop.eup %1001  ;;  %v662_v11 = vmul.f32 %v1000_v10, %v1210_v31  ;;  %1009 = vrcp.f32 %v550_v50 }
 0x13b   :  { %v1004_v13 = vpop.eup %1003  ;;  %699 = vst [vmem:[%s1545_s3 + $0xf8] sm:$0xff] %v660_v41  ;;  %v664_v14 = vmul.f32 %v1002_v52, %v49_v30 }
 0x13c   :  { %v1006_v15 = vpop.eup %1005  ;;  %701 = vst [vmem:[%s1545_s3 + $0x108] sm:$0xff] %v662_v11  ;;  %v549_v16 = vadd.f32 1.0, %v1004_v13 }
 0x13d   :  { %703 = vst.msk [vmem:[%s1545_s3 + $0x118] sm:$0xff] %vm82_vm1, %v664_v14  ;;  %v663_v31 = vmul.f32 %v1006_v15, %v48_v12 }
 0x13e   :  { %1011 = vrcp.f32 %v549_v16 }
 0x13f   :  { %702 = vst [vmem:[%s1545_s3 + $0x110] sm:$0xff] %v663_v31 }
 0x140   :  { %v1008_v22 = vpop.eup %1007 }
 0x141   :  { %v665_v27 = vmul.f32 %v1008_v22, %v1222_v32 }
 0x143   :  { %704 = vst [vmem:[%s1545_s3 + $0x120] sm:$0xff] %v665_v27 }
 0x144   :  { %v1010_v19 = vpop.eup %1009 }
 0x145   :  { %v667_v34 = vmul.f32 %v1010_v19, %v52_v3 }
 0x147   :  { %706 = vst.msk [vmem:[%s1545_s3 + $0x130] sm:$0xff] %vm82_vm1, %v667_v34 }
 0x148   :  { %v1012_v32 = vpop.eup %1011 }
 0x149   :  { %v666_v36 = vmul.f32 %v1012_v32, %v51_v35 }
 0x14b   :  { %705 = vst [vmem:[%s1545_s3 + $0x128] sm:$0xff] %v666_v36 }

</bundles_post_ra>
